<compile_context>
chip_gen: v7x
topology: tpu7x:2x2x1
jax: 0.10.0
libtpu: 0.0.40
codegen_flags: <defaults>
</compile_context>

<pallas_src>
import math
from functools import partial

import jax
import jax.numpy as jnp
from jax import lax
from jax.experimental import pallas as pl
from jax.experimental.pallas import tpu as pltpu

_GELU_K = 0.044715
_GELU_C = 2.0 * math.sqrt(2.0 / math.pi)   # folded: 0.5*(1+tanh(u)) == sigmoid(2u)


def _round_up(n, m):
    return ((n + m - 1) // m) * m


def _gelu_new(h):
    # NewGELUActivation: 0.5*h*(1 + tanh(sqrt(2/pi)*(h + 0.044715 h^3)))
    #                  == h * sigmoid(2*sqrt(2/pi)*(h + 0.044715 h^3))
    return h * jax.nn.sigmoid(_GELU_C * (h + _GELU_K * (h * h * h)))


def _mlp_kernel(x_ref, w1_ref, b1_ref, w2_ref, b2_ref, o_ref, *, i_chunk):
    tm = x_ref.shape[0]
    inter = w1_ref.shape[1]
    hidden = w2_ref.shape[1]

    # bf16 MXU operands, f32 accumulation.
    x_bf = x_ref[...].astype(jnp.bfloat16)

    if i_chunk >= inter:
        # Single-pass: whole intermediate fits comfortably in VMEM.
        h = jnp.dot(x_bf, w1_ref[...], preferred_element_type=jnp.float32)
        h = h + b1_ref[...]
        g = _gelu_new(h)
        out = jnp.dot(g.astype(jnp.bfloat16), w2_ref[...],
                      preferred_element_type=jnp.float32)
    else:
        # Chunk the intermediate dimension: caps the live [TM, i_chunk]
        # intermediates so TM can stay MXU-sized under tight VMEM (v7x).
        n_chunks = inter // i_chunk

        def body(c, acc):
            start = pl.multiple_of(c * i_chunk, i_chunk)
            hc = jnp.dot(x_bf, w1_ref[:, pl.ds(start, i_chunk)],
                         preferred_element_type=jnp.float32)
            hc = hc + b1_ref[:, pl.ds(start, i_chunk)]
            gc = _gelu_new(hc)
            return acc + jnp.dot(gc.astype(jnp.bfloat16),
                                 w2_ref[pl.ds(start, i_chunk), :],
                                 preferred_element_type=jnp.float32)

        acc0 = jnp.zeros((tm, hidden), jnp.float32)
        out = lax.fori_loop(0, n_chunks, body, acc0, unroll=True)

    out = out + b2_ref[...]
    # Dropout: inference / eval mode => identity.
    # TODO(synk): training-mode dropout (pltpu.prng_random_bits masking) not implemented.
    o_ref[...] = out.astype(o_ref.dtype)


def _vmem_capacity_bytes():
    """Generation-aware VMEM capacity (128 MiB v5e/v6e, 64 MiB/TC v7x)."""
    try:
        info = pltpu.get_tpu_info()
        cap = getattr(info, "vmem_capacity_bytes", None)
        if cap:
            return int(cap)
    except Exception:
        pass
    return 64 * 1024 * 1024   # conservative fallback (v7x per-core)


def prepare_mlp_params(w1, b1, w2, b2):
    """One-time param prep (hoisted out of the per-call path): bf16 MXU weights,
    f32 row-vector biases."""
    return (w1.astype(jnp.bfloat16),
            jnp.asarray(b1, jnp.float32).reshape(1, -1),
            w2.astype(jnp.bfloat16),
            jnp.asarray(b2, jnp.float32).reshape(1, -1))


def mlp_pallas(x, w1_bf, b1_f, w2_bf, b2_f, *, tile_m=512, intermediate_chunk=512):
    """x: [B, S, H] -> [B, S, H].  w1_bf: [H, I] bf16, b1_f: [1, I] f32,
    w2_bf: [I, H] bf16, b2_f: [1, H] f32 (see prepare_mlp_params)."""
    B, S, H = x.shape
    I = w1_bf.shape[1]
    N = B * S
    out_dtype = x.dtype
    act_itemsize = jnp.dtype(out_dtype).itemsize

    # ---- token-tile size: multiple of 8, never larger than the array -------
    tile_m = max(8, _round_up(tile_m, 8))
    if N < 8:
        TM = N                                   # full-dim block (allowed)
    else:
        TM = min(tile_m, (N // 8) * 8)

    # ---- intermediate chunk: lane-aligned divisor of I (or full I) ----------
    if I <= intermediate_chunk or intermediate_chunk % 128 != 0 or I % intermediate_chunk != 0:
        IC = I
    else:
        IC = intermediate_chunk

    # ---- VMEM accounting (single-buffered weights, double-buffered tiles,
    #      plus the intermediates the kernel actually materializes) ----------
    def _est(tm, ic):
        w = (H * I + I * H) * 2 + (I + H) * 4            # bf16 weights + f32 biases (x1)
        act = 2 * 2 * tm * H * act_itemsize              # x/out tiles, double-buffered
        live = (tm * H * 2                                # x bf16 copy
                + 2 * tm * ic * 4                         # h, g (f32)
                + tm * ic * 2                             # g bf16 copy
                + tm * H * 4)                             # f32 accumulator / out
        return w + act + live

    cap = _vmem_capacity_bytes()
    budget = int(0.70 * cap)
    while _est(TM, IC) > budget:
        if IC > 128 and (IC // 2) % 128 == 0 and I % (IC // 2) == 0:
            IC //= 2                                      # shrink intermediate chunk first
        elif TM > 256:
            TM = max(256, _round_up(TM // 2, 8))          # keep MXU-sized when possible
        elif TM > 8:
            TM = max(8, _round_up(TM // 2, 8))
        else:
            break

    grid_m = pl.cdiv(N, TM)                               # partial last block: no host pad
    x2d = x.reshape(N, H)

    cost = pl.CostEstimate(
        flops=4 * N * H * I,                              # two [*,H]x[H,I]-sized matmuls
        transcendentals=N * I,                            # one sigmoid per intermediate elem
        bytes_accessed=(N * H * act_itemsize * 2          # x in + out
                        + (H * I + I * H) * 2             # bf16 weights
                        + (I + H) * 4),                   # biases
    )
    vmem_limit = int(min(0.9 * cap, max(2 * _est(TM, IC), 32 * 1024 * 1024)))

    def _build(weights_single_buffered):
        if weights_single_buffered:
            def wspec(shape):
                # constant index_map => one resident copy; no per-step re-DMA.
                return pl.BlockSpec(shape, lambda i: (0, 0),
                                    pipeline_mode=pl.Buffered(1))
        else:
            def wspec(shape):
                return pl.BlockSpec(shape, lambda i: (0, 0))

        grid_spec = pltpu.PrefetchScalarGridSpec(
            num_scalar_prefetch=0,
            grid=(grid_m,),
            in_specs=[
                pl.BlockSpec((TM, H), lambda i: (i, 0)),  # x tile (streamed)
                wspec((H, I)),                            # W1 (VMEM-resident)
                wspec((1, I)),                            # b1
                wspec((I, H)),                            # W2
                wspec((1, H)),                            # b2
            ],
            out_specs=pl.BlockSpec((TM, H), lambda i: (i, 0)),
        )
        return pl.pallas_call(
            partial(_mlp_kernel, i_chunk=IC),
            out_shape=jax.ShapeDtypeStruct((N, H), out_dtype),
            grid_spec=grid_spec,
            compiler_params=pltpu.CompilerParams(
                dimension_semantics=("parallel",),        # shard token tiles on v7x megacore
                vmem_limit_bytes=vmem_limit,
            ),
            cost_estimate=cost,
        )

    try:
        out2d = _build(True)(x2d, w1_bf, b1_f, w2_bf, b2_f)
    except Exception:
        # pl.Buffered / pipeline_mode unsupported on this build: identical
        # semantics with default (double-buffered) weight specs.
        out2d = _build(False)(x2d, w1_bf, b1_f, w2_bf, b2_f)

    return out2d.reshape(B, S, H)


def reference_mlp(x, w1, b1, w2, b2):
    """Pure-JAX f32 reference matching the PyTorch forward (eval mode)."""
    h = x @ w1 + b1[0]
    c = math.sqrt(2.0 / math.pi)
    g = 0.5 * h * (1.0 + jnp.tanh(c * (h + 0.044715 * jnp.power(h, 3.0))))
    return g @ w2 + b2[0]


if __name__ == "__main__":
    # config: hidden_size=32, intermediate_size=64, hidden_dropout_prob=0.1
    B, S, H, I = 2, 8, 32, 64

    key = jax.random.PRNGKey(0)
    (kx, kw1, kb1, kw2, kb2, kx2, kx3, kw3, kb3, kw4, kb4) = jax.random.split(key, 11)

    x = jax.random.normal(kx, (B, S, H), dtype=jnp.float32)
    # Deterministic parameter init (analogue of nn.Linear default init scale).
    w1 = jax.random.uniform(kw1, (H, I), jnp.float32, -1.0, 1.0) / math.sqrt(H)
    b1 = jax.random.uniform(kb1, (1, I), jnp.float32, -1.0, 1.0) / math.sqrt(H)
    w2 = jax.random.uniform(kw2, (I, H), jnp.float32, -1.0, 1.0) / math.sqrt(I)
    b2 = jax.random.uniform(kb2, (1, H), jnp.float32, -1.0, 1.0) / math.sqrt(I)

    params = prepare_mlp_params(w1, b1, w2, b2)   # hoisted bf16 casts (done once)

    # Case 1: single tile.
    out = jax.block_until_ready(mlp_pallas(x, *params))
    ref = reference_mlp(x, w1, b1, w2, b2)
    assert out.shape == (B, S, H)
    max_diff = float(jnp.max(jnp.abs(out - ref)))
    assert jnp.allclose(out, ref, atol=5e-2, rtol=5e-2), (
        f"mismatch vs reference: max abs diff = {max_diff}")

    # Case 2: multi-tile grid + partial last block (no host-side pad/slice).
    B2, S2 = 3, 50   # N = 150, tile 64 -> 3 blocks, last one partial
    x2 = jax.random.normal(kx2, (B2, S2, H), dtype=jnp.float32)
    out2 = jax.block_until_ready(mlp_pallas(x2, *params, tile_m=64))
    ref2 = reference_mlp(x2, w1, b1, w2, b2)
    assert out2.shape == (B2, S2, H)
    max_diff2 = float(jnp.max(jnp.abs(out2 - ref2)))
    assert jnp.allclose(out2, ref2, atol=5e-2, rtol=5e-2), (
        f"tiled-path mismatch: max abs diff = {max_diff2}")

    # Case 3: exercise the intermediate-dimension chunked path (I split in 2).
    H3, I3 = 128, 512
    x3 = jax.random.normal(kx3, (2, 8, H3), dtype=jnp.float32)
    w3 = jax.random.uniform(kw3, (H3, I3), jnp.float32, -1.0, 1.0) / math.sqrt(H3)
    b3 = jax.random.uniform(kb3, (1, I3), jnp.float32, -1.0, 1.0) / math.sqrt(H3)
    w4 = jax.random.uniform(kw4, (I3, H3), jnp.float32, -1.0, 1.0) / math.sqrt(I3)
    b4 = jax.random.uniform(kb4, (1, H3), jnp.float32, -1.0, 1.0) / math.sqrt(I3)
    params3 = prepare_mlp_params(w3, b3, w4, b4)
    out3 = jax.block_until_ready(mlp_pallas(x3, *params3, intermediate_chunk=256))
    ref3 = reference_mlp(x3, w3, b3, w4, b4)
    assert out3.shape == (2, 8, H3)
    max_diff3 = float(jnp.max(jnp.abs(out3 - ref3)))
    assert jnp.allclose(out3, ref3, atol=5e-2, rtol=5e-2), (
        f"chunked-path mismatch: max abs diff = {max_diff3}")

    print("KERNEL_OK")
</pallas_src>

<mosaic_0001>
module attributes {stable_mosaic.version = 11 : i64} {
  func.func @_mlp_kernel(%arg0: i32, %arg1: memref<16x32xf32, #tpu.memory_space<vmem>>, %arg2: memref<32x64xbf16, #tpu.memory_space<vmem>>, %arg3: memref<1x64xf32, #tpu.memory_space<vmem>>, %arg4: memref<64x32xbf16, #tpu.memory_space<vmem>>, %arg5: memref<1x32xf32, #tpu.memory_space<vmem>>, %arg6: memref<16x32xf32, #tpu.memory_space<vmem>>) attributes {dimension_semantics = [#tpu.dimension_semantics<parallel>], iteration_bounds = array<i64: 1>, scalar_prefetch = 0 : i64, scratch_operands = 0 : i64, tpu.core_type = #tpu.core_type<tc>, window_params = [{transform_indices = @transform_0, window_bounds = array<i64: 16, 32>}, {pipeline_mode = #tpu.pipeline_mode<synchronous>, transform_indices = @transform_1, window_bounds = array<i64: 32, 64>}, {pipeline_mode = #tpu.pipeline_mode<synchronous>, transform_indices = @transform_2, window_bounds = array<i64: 1, 64>}, {pipeline_mode = #tpu.pipeline_mode<synchronous>, transform_indices = @transform_3, window_bounds = array<i64: 64, 32>}, {pipeline_mode = #tpu.pipeline_mode<synchronous>, transform_indices = @transform_4, window_bounds = array<i64: 1, 32>}, {transform_indices = @transform_5, window_bounds = array<i64: 16, 32>}]} {
    %c0 = arith.constant 0 : index
    %c0_0 = arith.constant 0 : index
    %0 = vector.load %arg1[%c0, %c0_0] : memref<16x32xf32, #tpu.memory_space<vmem>>, vector<16x32xf32>
    %1 = arith.truncf %0 : vector<16x32xf32> to vector<16x32xbf16>
    %c0_1 = arith.constant 0 : index
    %c0_2 = arith.constant 0 : index
    %2 = vector.load %arg2[%c0_1, %c0_2] : memref<32x64xbf16, #tpu.memory_space<vmem>>, vector<32x64xbf16>
    %cst = arith.constant dense<0.000000e+00> : vector<16x64xf32>
    %3 = tpu.matmul %1, %2, %cst {dimension_numbers = #tpu.dot_dimension_numbers<[1], [0], [0], [1], [0, 0, 1, 1], [], []>} : vector<16x32xbf16>, vector<32x64xbf16>, vector<16x64xf32> -> vector<16x64xf32>
    %c0_3 = arith.constant 0 : index
    %c0_4 = arith.constant 0 : index
    %4 = vector.load %arg3[%c0_3, %c0_4] : memref<1x64xf32, #tpu.memory_space<vmem>>, vector<1x64xf32>
    %5 = vector.broadcast %4 : vector<1x64xf32> to vector<16x64xf32>
    %6 = arith.addf %3, %5 : vector<16x64xf32>
    %7 = arith.mulf %6, %6 : vector<16x64xf32>
    %8 = arith.mulf %7, %6 : vector<16x64xf32>
    %cst_5 = arith.constant 4.471500e-02 : f32
    %9 = vector.broadcast %cst_5 : f32 to vector<16x64xf32>
    %10 = arith.mulf %9, %8 : vector<16x64xf32>
    %11 = arith.addf %6, %10 : vector<16x64xf32>
    %cst_6 = arith.constant 1.59576917 : f32
    %12 = vector.broadcast %cst_6 : f32 to vector<16x64xf32>
    %13 = arith.mulf %12, %11 : vector<16x64xf32>
    %14 = arith.negf %13 : vector<16x64xf32>
    %15 = math.exp %14 : vector<16x64xf32>
    %cst_7 = arith.constant 1.000000e+00 : f32
    %16 = vector.broadcast %cst_7 : f32 to vector<16x64xf32>
    %17 = arith.addf %16, %15 : vector<16x64xf32>
    %18 = arith.divf %16, %17 : vector<16x64xf32>
    %19 = arith.mulf %6, %18 : vector<16x64xf32>
    %20 = arith.truncf %19 : vector<16x64xf32> to vector<16x64xbf16>
    %c0_8 = arith.constant 0 : index
    %c0_9 = arith.constant 0 : index
    %21 = vector.load %arg4[%c0_8, %c0_9] : memref<64x32xbf16, #tpu.memory_space<vmem>>, vector<64x32xbf16>
    %cst_10 = arith.constant dense<0.000000e+00> : vector<16x32xf32>
    %22 = tpu.matmul %20, %21, %cst_10 {dimension_numbers = #tpu.dot_dimension_numbers<[1], [0], [0], [1], [0, 0, 1, 1], [], []>} : vector<16x64xbf16>, vector<64x32xbf16>, vector<16x32xf32> -> vector<16x32xf32>
    %c0_11 = arith.constant 0 : index
    %c0_12 = arith.constant 0 : index
    %23 = vector.load %arg5[%c0_11, %c0_12] : memref<1x32xf32, #tpu.memory_space<vmem>>, vector<1x32xf32>
    %24 = vector.broadcast %23 : vector<1x32xf32> to vector<16x32xf32>
    %25 = arith.addf %22, %24 : vector<16x32xf32>
    %c0_13 = arith.constant 0 : index
    %c0_14 = arith.constant 0 : index
    %26 = vector.load %arg6[%c0_13, %c0_14] : memref<16x32xf32, #tpu.memory_space<vmem>>, vector<16x32xf32>
    tpu.vector_store %arg6[%c0_13, %c0_14], %25 {strides = array<i32>} : memref<16x32xf32, #tpu.memory_space<vmem>>, vector<16x32xf32>,
    return
  }
  func.func @transform_0(%arg0: i32) -> (i32, i32) {
    %c0_i32 = arith.constant 0 : i32
    %c0_i32_0 = arith.constant 0 : i32
    return %arg0, %c0_i32 : i32, i32
  }
  func.func @transform_1(%arg0: i32) -> (i32, i32) {
    %c0_i32 = arith.constant 0 : i32
    %c0_i32_0 = arith.constant 0 : i32
    %c0_i32_1 = arith.constant 0 : i32
    return %c0_i32, %c0_i32_0 : i32, i32
  }
  func.func @transform_2(%arg0: i32) -> (i32, i32) {
    %c0_i32 = arith.constant 0 : i32
    %c0_i32_0 = arith.constant 0 : i32
    %c0_i32_1 = arith.constant 0 : i32
    return %c0_i32, %c0_i32_0 : i32, i32
  }
  func.func @transform_3(%arg0: i32) -> (i32, i32) {
    %c0_i32 = arith.constant 0 : i32
    %c0_i32_0 = arith.constant 0 : i32
    %c0_i32_1 = arith.constant 0 : i32
    return %c0_i32, %c0_i32_0 : i32, i32
  }
  func.func @transform_4(%arg0: i32) -> (i32, i32) {
    %c0_i32 = arith.constant 0 : i32
    %c0_i32_0 = arith.constant 0 : i32
    %c0_i32_1 = arith.constant 0 : i32
    return %c0_i32, %c0_i32_0 : i32, i32
  }
  func.func @transform_5(%arg0: i32) -> (i32, i32) {
    %c0_i32 = arith.constant 0 : i32
    %c0_i32_0 = arith.constant 0 : i32
    return %arg0, %c0_i32 : i32, i32
  }
}

module attributes {stable_mosaic.version = 11 : i64} {
  func.func @_mlp_kernel(%arg0: i32, %arg1: memref<16x32xf32, #tpu.memory_space<vmem>>, %arg2: memref<32x64xbf16, #tpu.memory_space<vmem>>, %arg3: memref<1x64xf32, #tpu.memory_space<vmem>>, %arg4: memref<64x32xbf16, #tpu.memory_space<vmem>>, %arg5: memref<1x32xf32, #tpu.memory_space<vmem>>, %arg6: memref<16x32xf32, #tpu.memory_space<vmem>>) attributes {dimension_semantics = [#tpu.dimension_semantics<parallel>], iteration_bounds = array<i64: 1>, scalar_prefetch = 0 : i64, scratch_operands = 0 : i64, tpu.core_type = #tpu.core_type<tc>, window_params = [{transform_indices = @transform_0, window_bounds = array<i64: 16, 32>}, {pipeline_mode = #tpu.pipeline_mode<synchronous>, transform_indices = @transform_1, window_bounds = array<i64: 32, 64>}, {pipeline_mode = #tpu.pipeline_mode<synchronous>, transform_indices = @transform_2, window_bounds = array<i64: 1, 64>}, {pipeline_mode = #tpu.pipeline_mode<synchronous>, transform_indices = @transform_3, window_bounds = array<i64: 64, 32>}, {pipeline_mode = #tpu.pipeline_mode<synchronous>, transform_indices = @transform_4, window_bounds = array<i64: 1, 32>}, {transform_indices = @transform_5, window_bounds = array<i64: 16, 32>}]} {
    %c0 = arith.constant 0 : index
    %c0_0 = arith.constant 0 : index
    %0 = vector.load %arg1[%c0, %c0_0] : memref<16x32xf32, #tpu.memory_space<vmem>>, vector<16x32xf32>
    %1 = arith.truncf %0 : vector<16x32xf32> to vector<16x32xbf16>
    %c0_1 = arith.constant 0 : index
    %c0_2 = arith.constant 0 : index
    %2 = vector.load %arg2[%c0_1, %c0_2] : memref<32x64xbf16, #tpu.memory_space<vmem>>, vector<32x64xbf16>
    %cst = arith.constant dense<0.000000e+00> : vector<16x64xf32>
    %3 = tpu.matmul %1, %2, %cst {dimension_numbers = #tpu.dot_dimension_numbers<[1], [0], [0], [1], [0, 0, 1, 1], [], []>} : vector<16x32xbf16>, vector<32x64xbf16>, vector<16x64xf32> -> vector<16x64xf32>
    %c0_3 = arith.constant 0 : index
    %c0_4 = arith.constant 0 : index
    %4 = vector.load %arg3[%c0_3, %c0_4] : memref<1x64xf32, #tpu.memory_space<vmem>>, vector<1x64xf32>
    %5 = vector.broadcast %4 : vector<1x64xf32> to vector<16x64xf32>
    %6 = arith.addf %3, %5 : vector<16x64xf32>
    %7 = arith.mulf %6, %6 : vector<16x64xf32>
    %8 = arith.mulf %7, %6 : vector<16x64xf32>
    %cst_5 = arith.constant 4.471500e-02 : f32
    %9 = vector.broadcast %cst_5 : f32 to vector<16x64xf32>
    %10 = arith.mulf %9, %8 : vector<16x64xf32>
    %11 = arith.addf %6, %10 : vector<16x64xf32>
    %cst_6 = arith.constant 1.59576917 : f32
    %12 = vector.broadcast %cst_6 : f32 to vector<16x64xf32>
    %13 = arith.mulf %12, %11 : vector<16x64xf32>
    %14 = arith.negf %13 : vector<16x64xf32>
    %15 = math.exp %14 : vector<16x64xf32>
    %cst_7 = arith.constant 1.000000e+00 : f32
    %16 = vector.broadcast %cst_7 : f32 to vector<16x64xf32>
    %17 = arith.addf %16, %15 : vector<16x64xf32>
    %18 = arith.divf %16, %17 : vector<16x64xf32>
    %19 = arith.mulf %6, %18 : vector<16x64xf32>
    %20 = arith.truncf %19 : vector<16x64xf32> to vector<16x64xbf16>
    %c0_8 = arith.constant 0 : index
    %c0_9 = arith.constant 0 : index
    %21 = vector.load %arg4[%c0_8, %c0_9] : memref<64x32xbf16, #tpu.memory_space<vmem>>, vector<64x32xbf16>
    %cst_10 = arith.constant dense<0.000000e+00> : vector<16x32xf32>
    %22 = tpu.matmul %20, %21, %cst_10 {dimension_numbers = #tpu.dot_dimension_numbers<[1], [0], [0], [1], [0, 0, 1, 1], [], []>} : vector<16x64xbf16>, vector<64x32xbf16>, vector<16x32xf32> -> vector<16x32xf32>
    %c0_11 = arith.constant 0 : index
    %c0_12 = arith.constant 0 : index
    %23 = vector.load %arg5[%c0_11, %c0_12] : memref<1x32xf32, #tpu.memory_space<vmem>>, vector<1x32xf32>
    %24 = vector.broadcast %23 : vector<1x32xf32> to vector<16x32xf32>
    %25 = arith.addf %22, %24 : vector<16x32xf32>
    %c0_13 = arith.constant 0 : index
    %c0_14 = arith.constant 0 : index
    %26 = vector.load %arg6[%c0_13, %c0_14] : memref<16x32xf32, #tpu.memory_space<vmem>>, vector<16x32xf32>
    tpu.vector_store %arg6[%c0_13, %c0_14], %25 {strides = array<i32>} : memref<16x32xf32, #tpu.memory_space<vmem>>, vector<16x32xf32>,
    return
  }
  func.func @transform_0(%arg0: i32) -> (i32, i32) {
    %c0_i32 = arith.constant 0 : i32
    %c0_i32_0 = arith.constant 0 : i32
    return %arg0, %c0_i32 : i32, i32
  }
  func.func @transform_1(%arg0: i32) -> (i32, i32) {
    %c0_i32 = arith.constant 0 : i32
    %c0_i32_0 = arith.constant 0 : i32
    %c0_i32_1 = arith.constant 0 : i32
    return %c0_i32, %c0_i32_0 : i32, i32
  }
  func.func @transform_2(%arg0: i32) -> (i32, i32) {
    %c0_i32 = arith.constant 0 : i32
    %c0_i32_0 = arith.constant 0 : i32
    %c0_i32_1 = arith.constant 0 : i32
    return %c0_i32, %c0_i32_0 : i32, i32
  }
  func.func @transform_3(%arg0: i32) -> (i32, i32) {
    %c0_i32 = arith.constant 0 : i32
    %c0_i32_0 = arith.constant 0 : i32
    %c0_i32_1 = arith.constant 0 : i32
    return %c0_i32, %c0_i32_0 : i32, i32
  }
  func.func @transform_4(%arg0: i32) -> (i32, i32) {
    %c0_i32 = arith.constant 0 : i32
    %c0_i32_0 = arith.constant 0 : i32
    %c0_i32_1 = arith.constant 0 : i32
    return %c0_i32, %c0_i32_0 : i32, i32
  }
  func.func @transform_5(%arg0: i32) -> (i32, i32) {
    %c0_i32 = arith.constant 0 : i32
    %c0_i32_0 = arith.constant 0 : i32
    return %arg0, %c0_i32 : i32, i32
  }
}

</mosaic_0001>

<bundles_post_ra>
// kernel: tpu_custom_call.1
= control target key start
LH: loop header
LB: loop body
LE: loop exit
PB: predicated region body
PF: predicated region fallthrough
CT: control target
= control target key end

     0   :  { %v303_v1 = vmov 0.0   ;;  %vm304_vm0 = vmmov 0   ;;  %s383_s0 = inlined_call_operand.vmem [shape: f32[16,32], index: 0, kind: input, shape index: {}]   ;;  %s384_s1 = inlined_call_operand.vmem [shape: bf16[32,64], index: 1, kind: input, shape index: {}]   ;;  %s385_s2 = inlined_call_operand.vmem [shape: f32[1,64], index: 2, kind: input, shape index: {}]   ;;  %s386_s3 = inlined_call_operand.vmem [shape: bf16[64,32], index: 3, kind: input, shape index: {}]   ;;  %s387_s4 = inlined_call_operand.vmem [shape: f32[1,32], index: 4, kind: input, shape index: {}]   ;;  %s388_s5 = inlined_call_operand.hbm [shape: f32[16,32], index: 5, kind: output, shape index: {}]  }
   0x1   :  { %v265_v0 = vld [vmem:[%s384_s1] sm:$0xff]   ;;  %240 = vmatprep.subr.bf16.mxu0 %v303_v1  ;;  %248 = vmatprep.subr.bf16.mxu1 %v303_v1  ;;  %v266_v2 = vld [vmem:[%s384_s1 + $0x8] sm:$0xff]  }
   0x2   :  { %241 = vmatpush3.bf16.msra.mxu0 %v265_v0  ;;  %244 = vmatprep.mubr.msk.bf16.mxu0 %vm304_vm0, %v303_v1  ;;  %v22_v3 = vld [vmem:[%s383_s0] sm:$0xff]  ;;  %v23_v4 = vld [vmem:[%s383_s0 + $0x8] sm:$0xff] }
   0x3   :  { %242 = vmatprep.subr.bf16.mxu0 %v303_v1  ;;  %256 = vmatprep.mubr.msk.bf16.mxu1 %vm304_vm0, %v303_v1  ;;  %v24_v5 = vpack.c.bf16 %v23_v4, %v22_v3 }
   0x4   :  { %10 = vsyncpa [#allocation3], 0  ;;  %vm48_vm1 = vcmask 261120   ;;  %v267_v6 = vld [vmem:[%s386_s3] sm:$0xff]   ;;  %v268_v7 = vld [vmem:[%s386_s3 + $0x8] sm:$0xff]   ;;  %vm157_vm2 = vcmask 523264  }
   0x5   :  { %249 = vmatpush3.bf16.msra.mxu1 %v267_v6  ;;  %v269_v8 = vld [vmem:[%s386_s3 + $0x10] sm:$0xff]   ;;  %v270_v9 = vld [vmem:[%s386_s3 + $0x18] sm:$0xff]   ;;  %v220_v10 = vld [vmem:[%s385_s2] ss:$0 sm:$0xff]  ;;  %s305_s9 = smov [#allocation2]  }
   0x6   :  { %243 = vmatpush3.bf16.msra.mxu0 %v266_v2  ;;  %250 = vmatprep.subr.bf16.mxu1 %v303_v1  ;;  %v226_v38 = vld [vmem:[%s387_s4] ss:$0 sm:$0xff]  ;;  %s209_s10 = sshll.u32 %s305_s9, 4  ;;  %s210_s10 = int_to_ptr.vmem [resolvable:$true] %s209_s10 }
   0x7   :  { %s279_s11 = scalar_lea.vmem %s210_s10, 256  ;;  %p284_p1 = scmp.lt.s32.totalorder %s210_s10, %s210_s10 }
   0x8   :  { %p280_p0 = scmp.ne.s32.totalorder %s210_s10, %s279_s11  ;;  %p285_p2 = scmp.lt.s32.totalorder %s279_s11, %s279_s11 }
   0x9   :  { %245 = vmatmul.mubr.msk.bf16.vlgmr.msra.gmra.mrb[0].mxu0 %vm48_vm1, %v24_v5  ;;  %251 = vmatpush3.bf16.msra.mxu1 %v268_v7 }
   0xa   :  { %252 = vmatprep.subr.bf16.mxu1 %v303_v1  ;;  %p286_p3 = por %p285_p2, %p284_p1 }
   0xc   :  { %p287_p4 = pnand %p286_p3, %p280_p0 }
   0xd   :  { %253 = vmatpush3.bf16.msra.mxu1 %v269_v8 }
   0xe   :  { %254 = vmatprep.subr.bf16.mxu1 %v303_v1 }
  0x11   :  { %255 = vmatpush3.bf16.msra.mxu1 %v270_v9 }
  0xdc   :  { %v86_v11 = vpop.f32.mrb[0].mxu0 }
  0xdd   :  { %v87_v12 = vadd.f32 %v220_v10, %v86_v11  ;;  %v246_v13 = vpop.f32.mrb[1].mxu0 }
  0xde   :  { %v89_v14 = vpop.f32.mrb[2].mxu0 }
  0xdf   :  { %v93_v15 = vmul.f32 %v87_v12, %v87_v12  ;;  %v90_v16 = vadd.f32 %v220_v10, %v89_v14  ;;  %v247_v17 = vpop.f32.mrb[3].mxu0 }
  0xe1   :  { %v95_v18 = vmul.f32 %v93_v15, %v87_v12  ;;  %v94_v19 = vmul.f32 %v90_v16, %v90_v16 }
  0xe3   :  { %v97_v20 = vmul.f32 0.044715, %v95_v18  ;;  %v96_v21 = vmul.f32 %v94_v19, %v90_v16 }
  0xe5   :  { %v99_v22 = vadd.f32 %v97_v20, %v87_v12  ;;  %v98_v23 = vmul.f32 0.044715, %v96_v21 }
  0xe7   :  { %v224_v24 = vmul.f32 -1.5957692, %v99_v22  ;;  %v100_v25 = vadd.f32 %v98_v23, %v90_v16 }
  0xe9   :  { %v105_v26 = vmul.f32 1.442695, %v224_v24  ;;  %v225_v27 = vmul.f32 -1.5957692, %v100_v25 }
  0xeb   :  { %271 = vpow2.f32 %v105_v26  ;;  %v107_v28 = vmul.f32 1.442695, %v225_v27 }
  0xed   :  { %273 = vpow2.f32 %v107_v28 }
  0xf5   :  { %v272_v29 = vpop.eup %271 }
  0xf6   :  { %v109_v30 = vadd.f32 1.0, %v272_v29 }
  0xf7   :  { %v274_v31 = vpop.eup %273 }
  0xf8   :  { %275 = vrcp.f32 %v109_v30  ;;  %v110_v32 = vadd.f32 1.0, %v274_v31 }
  0xfa   :  { %277 = vrcp.f32 %v110_v32 }
 0x102   :  { %v276_v33 = vpop.eup %275 }
 0x103   :  { %v115_v35 = vmul.f32 %v276_v33, %v87_v12 }
 0x104   :  { %v278_v34 = vpop.eup %277 }
 0x105   :  { %v116_v36 = vmul.f32 %v278_v34, %v90_v16 }
 0x107   :  { %v117_v37 = vpack.c.bf16 %v116_v36, %v115_v35 }
 0x109   :  { %257 = vmatmul.mubr.msk.bf16.vlgmr.msra.gmra.mrb[0].mxu1 %vm157_vm2, %v117_v37 }
 0x1dc   :  { %v195_v39 = vpop.f32.mrb[0].mxu1 }
 0x1dd   :  { %v196_v40 = vadd.f32 %v226_v38, %v195_v39  ;;  %v258_v41 = vpop.f32.mrb[1].mxu1 }
 0x1de   :  { %v198_v42 = vpop.f32.mrb[2].mxu1 }
 0x1df   :  { %202 = vst.msk [vmem:[#allocation2] sm:$0xff] %vm48_vm1, %v196_v40  ;;  %v199_v43 = vadd.f32 %v226_v38, %v198_v42  ;;  %v259_v44 = vpop.f32.mrb[3].mxu1 }
 0x1e1   :  { %203 = vst.msk [vmem:[#allocation2 + $0x8] sm:$0xff] %vm48_vm1, %v199_v43 }
 0x1e2   :  { %290 = shalt.err (!%p287_p4)
}
 0x1e3   :  { %s291_s13 = scalar_lea.hbm %s388_s5, 256 }
 0x1e4   :  { %p292_p5 = scmp.ne.s32.totalorder %s388_s5, %s291_s13  ;;  %p295_p6 = scmp.lt.u32.totalorder %s291_s13, %s388_s5 }
 0x1e6   :  { %p297_p7 = pnand %p295_p6, %p292_p5 }
 0x1e8   :  { %300 = shalt.err (!%p297_p7)
}
 0x1e9   :  { %s306_s18 = smov 128   ;;  %s307_s19 = smov 8  }
 0x1ea   :  { %215 = dma.vmem_to_hbm [thread:$0]  %s210_s10, 256, %s388_s5, [#allocation3], %s306_s18, %s306_s18, %s307_s19  }
 0x1eb   :  { %301 = dma.done.wait [#allocation3], 256  }
 0x1ec   :  { %302 = vsyncadd [#allocation3], 4294967040 }
 0x1ed   :  { %219 = vsyncpa [#allocation3], 1 }

// kernel: tpu_custom_call.1
= control target key start
LH: loop header
LB: loop body
LE: loop exit
PB: predicated region body
PF: predicated region fallthrough
CT: control target
= control target key end

     0   :  { %v303_v1 = vmov 0.0   ;;  %vm304_vm0 = vmmov 0   ;;  %s383_s0 = inlined_call_operand.vmem [shape: f32[16,32], index: 0, kind: input, shape index: {}]   ;;  %s384_s1 = inlined_call_operand.vmem [shape: bf16[32,64], index: 1, kind: input, shape index: {}]   ;;  %s385_s2 = inlined_call_operand.vmem [shape: f32[1,64], index: 2, kind: input, shape index: {}]   ;;  %s386_s3 = inlined_call_operand.vmem [shape: bf16[64,32], index: 3, kind: input, shape index: {}]   ;;  %s387_s4 = inlined_call_operand.vmem [shape: f32[1,32], index: 4, kind: input, shape index: {}]   ;;  %s388_s5 = inlined_call_operand.hbm [shape: f32[16,32], index: 5, kind: output, shape index: {}]  }
   0x1   :  { %v265_v0 = vld [vmem:[%s384_s1] sm:$0xff]   ;;  %240 = vmatprep.subr.bf16.mxu0 %v303_v1  ;;  %248 = vmatprep.subr.bf16.mxu1 %v303_v1  ;;  %v266_v2 = vld [vmem:[%s384_s1 + $0x8] sm:$0xff]  }
   0x2   :  { %241 = vmatpush3.bf16.msra.mxu0 %v265_v0  ;;  %244 = vmatprep.mubr.msk.bf16.mxu0 %vm304_vm0, %v303_v1  ;;  %v22_v3 = vld [vmem:[%s383_s0] sm:$0xff]  ;;  %v23_v4 = vld [vmem:[%s383_s0 + $0x8] sm:$0xff] }
   0x3   :  { %242 = vmatprep.subr.bf16.mxu0 %v303_v1  ;;  %256 = vmatprep.mubr.msk.bf16.mxu1 %vm304_vm0, %v303_v1  ;;  %v24_v5 = vpack.c.bf16 %v23_v4, %v22_v3 }
   0x4   :  { %10 = vsyncpa [#allocation3], 0  ;;  %vm48_vm1 = vcmask 261120   ;;  %v267_v6 = vld [vmem:[%s386_s3] sm:$0xff]   ;;  %v268_v7 = vld [vmem:[%s386_s3 + $0x8] sm:$0xff]   ;;  %vm157_vm2 = vcmask 523264  }
   0x5   :  { %249 = vmatpush3.bf16.msra.mxu1 %v267_v6  ;;  %v269_v8 = vld [vmem:[%s386_s3 + $0x10] sm:$0xff]   ;;  %v270_v9 = vld [vmem:[%s386_s3 + $0x18] sm:$0xff]   ;;  %v220_v10 = vld [vmem:[%s385_s2] ss:$0 sm:$0xff]  ;;  %s305_s9 = smov [#allocation2]  }
   0x6   :  { %243 = vmatpush3.bf16.msra.mxu0 %v266_v2  ;;  %250 = vmatprep.subr.bf16.mxu1 %v303_v1  ;;  %v226_v38 = vld [vmem:[%s387_s4] ss:$0 sm:$0xff]  ;;  %s209_s10 = sshll.u32 %s305_s9, 4  ;;  %s210_s10 = int_to_ptr.vmem [resolvable:$true] %s209_s10 }
   0x7   :  { %s279_s11 = scalar_lea.vmem %s210_s10, 256  ;;  %p284_p1 = scmp.lt.s32.totalorder %s210_s10, %s210_s10 }
   0x8   :  { %p280_p0 = scmp.ne.s32.totalorder %s210_s10, %s279_s11  ;;  %p285_p2 = scmp.lt.s32.totalorder %s279_s11, %s279_s11 }
   0x9   :  { %245 = vmatmul.mubr.msk.bf16.vlgmr.msra.gmra.mrb[0].mxu0 %vm48_vm1, %v24_v5  ;;  %251 = vmatpush3.bf16.msra.mxu1 %v268_v7 }
   0xa   :  { %252 = vmatprep.subr.bf16.mxu1 %v303_v1  ;;  %p286_p3 = por %p285_p2, %p284_p1 }
   0xc   :  { %p287_p4 = pnand %p286_p3, %p280_p0 }
   0xd   :  { %253 = vmatpush3.bf16.msra.mxu1 %v269_v8 }
   0xe   :  { %254 = vmatprep.subr.bf16.mxu1 %v303_v1 }
  0x11   :  { %255 = vmatpush3.bf16.msra.mxu1 %v270_v9 }
  0xdc   :  { %v86_v11 = vpop.f32.mrb[0].mxu0 }
  0xdd   :  { %v87_v12 = vadd.f32 %v220_v10, %v86_v11  ;;  %v246_v13 = vpop.f32.mrb[1].mxu0 }
  0xde   :  { %v89_v14 = vpop.f32.mrb[2].mxu0 }
  0xdf   :  { %v93_v15 = vmul.f32 %v87_v12, %v87_v12  ;;  %v90_v16 = vadd.f32 %v220_v10, %v89_v14  ;;  %v247_v17 = vpop.f32.mrb[3].mxu0 }
  0xe1   :  { %v95_v18 = vmul.f32 %v93_v15, %v87_v12  ;;  %v94_v19 = vmul.f32 %v90_v16, %v90_v16 }
  0xe3   :  { %v97_v20 = vmul.f32 0.044715, %v95_v18  ;;  %v96_v21 = vmul.f32 %v94_v19, %v90_v16 }
  0xe5   :  { %v99_v22 = vadd.f32 %v97_v20, %v87_v12  ;;  %v98_v23 = vmul.f32 0.044715, %v96_v21 }
  0xe7   :  { %v224_v24 = vmul.f32 -1.5957692, %v99_v22  ;;  %v100_v25 = vadd.f32 %v98_v23, %v90_v16 }
  0xe9   :  { %v105_v26 = vmul.f32 1.442695, %v224_v24  ;;  %v225_v27 = vmul.f32 -1.5957692, %v100_v25 }
  0xeb   :  { %271 = vpow2.f32 %v105_v26  ;;  %v107_v28 = vmul.f32 1.442695, %v225_v27 }
  0xed   :  { %273 = vpow2.f32 %v107_v28 }
  0xf5   :  { %v272_v29 = vpop.eup %271 }
  0xf6   :  { %v109_v30 = vadd.f32 1.0, %v272_v29 }
  0xf7   :  { %v274_v31 = vpop.eup %273 }
  0xf8   :  { %275 = vrcp.f32 %v109_v30  ;;  %v110_v32 = vadd.f32 1.0, %v274_v31 }
  0xfa   :  { %277 = vrcp.f32 %v110_v32 }
 0x102   :  { %v276_v33 = vpop.eup %275 }
 0x103   :  { %v115_v35 = vmul.f32 %v276_v33, %v87_v12 }
 0x104   :  { %v278_v34 = vpop.eup %277 }
 0x105   :  { %v116_v36 = vmul.f32 %v278_v34, %v90_v16 }
 0x107   :  { %v117_v37 = vpack.c.bf16 %v116_v36, %v115_v35 }
 0x109   :  { %257 = vmatmul.mubr.msk.bf16.vlgmr.msra.gmra.mrb[0].mxu1 %vm157_vm2, %v117_v37 }
 0x1dc   :  { %v195_v39 = vpop.f32.mrb[0].mxu1 }
 0x1dd   :  { %v196_v40 = vadd.f32 %v226_v38, %v195_v39  ;;  %v258_v41 = vpop.f32.mrb[1].mxu1 }
 0x1de   :  { %v198_v42 = vpop.f32.mrb[2].mxu1 }
 0x1df   :  { %202 = vst.msk [vmem:[#allocation2] sm:$0xff] %vm48_vm1, %v196_v40  ;;  %v199_v43 = vadd.f32 %v226_v38, %v198_v42  ;;  %v259_v44 = vpop.f32.mrb[3].mxu1 }
 0x1e1   :  { %203 = vst.msk [vmem:[#allocation2 + $0x8] sm:$0xff] %vm48_vm1, %v199_v43 }
 0x1e2   :  { %290 = shalt.err (!%p287_p4)
}
 0x1e3   :  { %s291_s13 = scalar_lea.hbm %s388_s5, 256 }
 0x1e4   :  { %p292_p5 = scmp.ne.s32.totalorder %s388_s5, %s291_s13  ;;  %p295_p6 = scmp.lt.u32.totalorder %s291_s13, %s388_s5 }
 0x1e6   :  { %p297_p7 = pnand %p295_p6, %p292_p5 }
 0x1e8   :  { %300 = shalt.err (!%p297_p7)
}
 0x1e9   :  { %s306_s18 = smov 128   ;;  %s307_s19 = smov 8  }
 0x1ea   :  { %215 = dma.vmem_to_hbm [thread:$0]  %s210_s10, 256, %s388_s5, [#allocation3], %s306_s18, %s306_s18, %s307_s19  }
 0x1eb   :  { %301 = dma.done.wait [#allocation3], 256  }
 0x1ec   :  { %302 = vsyncadd [#allocation3], 4294967040 }
 0x1ed   :  { %219 = vsyncpa [#allocation3], 1 }

</bundles_post_ra>
